<compile_context>
chip_gen: v7x
topology: tpu7x:2x2x1
jax: 0.10.0
libtpu: 0.0.40
codegen_flags: <defaults>
</compile_context>

<pallas_src>
import functools

import numpy as np
import jax
import jax.numpy as jnp
from jax.experimental import pallas as pl
from jax.experimental.pallas import tpu as pltpu

KERNEL_SIZE = 25
PAD = (KERNEL_SIZE - 1) // 2


def _gated_sum_kernel(
    x_ref,                    # (TB, L*C)   flattened (time, channel) rows
    wproj_ref, bproj_ref,     # (L*C, 2L), (1, 2L)  decomp + input_layer, both streams
    wg_ref, bg_ref,           # (2L, 2L), (1, 2L)   input_gate (shared W, block-diag)
    w1_ref, b1_ref,           # (2L, 2H), (1, 2H)   trend_mlp[0] ⊕ residual_mlp[0]
    w2_ref, b2_ref,           # (2H, 2H), (1, 2H)   trend_mlp[1] ⊕ residual_mlp[1]
    wo_ref, bo_ref,           # (2H, 2P), (1, 2P)   output_layer (shared W, block-diag)
    wog_ref,                  # (P, 1)              output_gate weight
    bog_ref,                  # (1, 1) in SMEM      output_gate bias (scalar)
    out_ref,                  # (TB, P)
):
    P = out_ref.shape[1]
    x = x_ref[...]

    # series_decomp (replicate-padded moving average) + input_layer for BOTH
    # streams in one MXU matmul: s[:, :L] = trend value, s[:, L:] = residual.
    s = jnp.dot(x, wproj_ref[...], preferred_element_type=jnp.float32) + bproj_ref[...]

    # input_gate: sigmoid(Linear(L, L)) applied to each stream (shared weights).
    g = jax.nn.sigmoid(
        jnp.dot(s, wg_ref[...], preferred_element_type=jnp.float32) + bg_ref[...])
    s = s * g

    # trend_mlp / residual_mlp: two stacked Linear layers (block-diag weights).
    h = jnp.dot(s, w1_ref[...], preferred_element_type=jnp.float32) + b1_ref[...]
    h = jnp.dot(h, w2_ref[...], preferred_element_type=jnp.float32) + b2_ref[...]

    # output_layer: Linear(H, P) on both streams (shared weights, block-diag).
    o = jnp.dot(h, wo_ref[...], preferred_element_type=jnp.float32) + bo_ref[...]
    ot = o[:, :P]             # output_trend     (TB, P)
    orr = o[:, P:]            # output_residual  (TB, P)

    # output_gate: sigmoid(Linear(P, 1)); convex combination of the two streams.
    tw = jax.nn.sigmoid(
        jnp.dot(ot, wog_ref[...], preferred_element_type=jnp.float32) + bog_ref[0, 0])
    out_ref[...] = ot * tw + orr * (1.0 - tw)


def _avg_matrix(L):
    """(L, L) matrix M: trend[i] = sum_l M[i, l] * x[l], replicate padding folded in."""
    m = np.zeros((L, L), np.float32)
    for i in range(L):
        for k in range(i - PAD, i + PAD + 1):
            j = min(max(k, 0), L - 1)
            m[i, j] += 1.0 / KERNEL_SIZE
    return jnp.asarray(m)


def gated_sum_forward(x, params, *, batch_tile=2048):
    """x: (B, L, C) float32.  Returns (B, pred_len, 1)."""
    B, L, C = x.shape
    H = params["w_t2"].shape[0]
    P = params["w_o"].shape[0]
    f32 = jnp.float32

    # --- fold series_decomp (with edge replication) + input_layer into one matrix ---
    M = _avg_matrix(L)                                        # (L, L)
    win = params["w_in"].reshape(C).astype(f32)               # (C,)
    a_trend = jnp.einsum("c,il->lci", win, M).reshape(L * C, L)
    a_resid = jnp.einsum("c,il->lci", win,
                         jnp.eye(L, dtype=f32) - M).reshape(L * C, L)
    w_proj = jnp.concatenate([a_trend, a_resid], axis=1)      # (L*C, 2L)
    b_proj = jnp.broadcast_to(params["b_in"].reshape(1, 1), (1, 2 * L)).astype(f32)

    def bdiag(a, b):
        a = a.astype(f32)
        b = b.astype(f32)
        top = jnp.concatenate([a, jnp.zeros((a.shape[0], b.shape[1]), f32)], axis=1)
        bot = jnp.concatenate([jnp.zeros((b.shape[0], a.shape[1]), f32), b], axis=1)
        return jnp.concatenate([top, bot], axis=0)

    wg_t = params["w_g"].T
    wg2 = bdiag(wg_t, wg_t)                                   # (2L, 2L)
    bg2 = jnp.concatenate([params["b_g"], params["b_g"]]).reshape(1, 2 * L)
    w1 = bdiag(params["w_t1"].T, params["w_r1"].T)            # (2L, 2H)
    b1 = jnp.concatenate([params["b_t1"], params["b_r1"]]).reshape(1, 2 * H)
    w2 = bdiag(params["w_t2"].T, params["w_r2"].T)            # (2H, 2H)
    b2 = jnp.concatenate([params["b_t2"], params["b_r2"]]).reshape(1, 2 * H)
    wo2 = bdiag(params["w_o"].T, params["w_o"].T)             # (2H, 2P)
    bo2 = jnp.concatenate([params["b_o"], params["b_o"]]).reshape(1, 2 * P)
    wog = params["w_og"].reshape(1, P).T.astype(f32)          # (P, 1)
    bog = params["b_og"].reshape(1, 1).astype(f32)

    # --- lane-dense input: flatten (L, C) -> L*C; pad batch to a tile multiple ---
    x_flat = x.reshape(B, L * C).astype(f32)
    TB = min(batch_tile, B)
    n_tiles = -(-B // TB)
    B_pad = n_tiles * TB
    if B_pad != B:
        x_flat = jnp.pad(x_flat, ((0, B_pad - B), (0, 0)))

    weights = [w_proj, b_proj, wg2, bg2, w1, b1, w2, b2, wo2, bo2, wog]

    def wspec(a):
        # grid-invariant weight tile, kept whole in VMEM.
        return pl.BlockSpec(a.shape, lambda b: (0, 0))

    in_specs = ([pl.BlockSpec((TB, L * C), lambda b: (b, 0))]
                + [wspec(a) for a in weights]
                + [pl.BlockSpec((1, 1), lambda b: (0, 0), memory_space=pltpu.SMEM)])

    out = pl.pallas_call(
        _gated_sum_kernel,
        out_shape=jax.ShapeDtypeStruct((B_pad, P), f32),
        grid=(n_tiles,),
        in_specs=in_specs,
        out_specs=pl.BlockSpec((TB, P), lambda b: (b, 0)),
        compiler_params=pltpu.CompilerParams(dimension_semantics=("parallel",)),
    )(x_flat, *weights, bog)

    return out[:B, :, None]                                   # (B, P, 1)


# ---------------------------------------------------------------------------
# Pure-JAX reference (mirrors the PyTorch forward exactly) for validation.
# ---------------------------------------------------------------------------
def _linear(z, w, b):
    return z @ w.T + b


def reference_forward(x, p):
    B, L, C = x.shape
    front = jnp.repeat(x[:, :1, :], PAD, axis=1)
    end = jnp.repeat(x[:, -1:, :], PAD, axis=1)
    xp = jnp.concatenate([front, x, end], axis=1)
    trend = jnp.mean(
        jnp.stack([xp[:, j:j + L, :] for j in range(KERNEL_SIZE)], axis=0), axis=0)
    res = x - trend
    trend = _linear(trend, p["w_in"], p["b_in"]).transpose(0, 2, 1)   # (B,1,L)
    res = _linear(res, p["w_in"], p["b_in"]).transpose(0, 2, 1)
    trend = trend * jax.nn.sigmoid(_linear(trend, p["w_g"], p["b_g"]))
    res = res * jax.nn.sigmoid(_linear(res, p["w_g"], p["b_g"]))
    th = _linear(_linear(trend, p["w_t1"], p["b_t1"]), p["w_t2"], p["b_t2"])
    rh = _linear(_linear(res, p["w_r1"], p["b_r1"]), p["w_r2"], p["b_r2"])
    ot = _linear(th, p["w_o"], p["b_o"])
    orr = _linear(rh, p["w_o"], p["b_o"])
    tw = jax.nn.sigmoid(_linear(ot, p["w_og"], p["b_og"]))
    ws = ot * tw + orr * (1.0 - tw)
    return ws.transpose(0, 2, 1)


def init_params(key, seq_len, num_features, pred_len, hidden_units):
    def linear_init(key, out_f, in_f):
        kw, kb = jax.random.split(key)
        bound = 1.0 / jnp.sqrt(in_f)
        w = jax.random.uniform(kw, (out_f, in_f), jnp.float32, -bound, bound)
        b = jax.random.uniform(kb, (out_f,), jnp.float32, -bound, bound)
        return w, b

    keys = jax.random.split(key, 8)
    p = {}
    p["w_in"], p["b_in"] = linear_init(keys[0], 1, num_features)
    p["w_g"], p["b_g"] = linear_init(keys[1], seq_len, seq_len)
    p["w_t1"], p["b_t1"] = linear_init(keys[2], hidden_units, seq_len)
    p["w_t2"], p["b_t2"] = linear_init(keys[3], hidden_units, hidden_units)
    p["w_r1"], p["b_r1"] = linear_init(keys[4], hidden_units, seq_len)
    p["w_r2"], p["b_r2"] = linear_init(keys[5], hidden_units, hidden_units)
    p["w_o"], p["b_o"] = linear_init(keys[6], pred_len, hidden_units)
    p["w_og"], p["b_og"] = linear_init(keys[7], 1, pred_len)
    return p


if __name__ == "__main__":
    B, SEQ_LEN, NUM_FEATURES, PRED_LEN, HIDDEN = 10, 32, 4, 16, 32

    key = jax.random.PRNGKey(0)
    kx, kp = jax.random.split(key)
    x = jax.random.normal(kx, (B, SEQ_LEN, NUM_FEATURES), jnp.float32)
    params = init_params(kp, SEQ_LEN, NUM_FEATURES, PRED_LEN, HIDDEN)

    # Small batch_tile here so the test exercises a multi-step grid + batch padding;
    # production defaults to batch_tile=2048 (~1 MB input blocks, HBM-roofline sized).
    fwd = jax.jit(functools.partial(gated_sum_forward, batch_tile=8))
    out = jax.block_until_ready(fwd(x, params))

    ref = reference_forward(x, params)
    assert out.shape == (B, PRED_LEN, 1), out.shape
    assert jnp.allclose(out, ref, rtol=2e-2, atol=2e-2), (
        float(jnp.max(jnp.abs(out - ref))))

    print("KERNEL_OK")
</pallas_src>

<mosaic_0001>
module attributes {stable_mosaic.version = 11 : i64} {
  func.func @_gated_sum_kernel(%arg0: i32, %arg1: memref<8x128xf32, #tpu.memory_space<vmem>>, %arg2: memref<128x64xf32, #tpu.memory_space<vmem>>, %arg3: memref<1x64xf32, #tpu.memory_space<vmem>>, %arg4: memref<64x64xf32, #tpu.memory_space<vmem>>, %arg5: memref<1x64xf32, #tpu.memory_space<vmem>>, %arg6: memref<64x64xf32, #tpu.memory_space<vmem>>, %arg7: memref<1x64xf32, #tpu.memory_space<vmem>>, %arg8: memref<64x64xf32, #tpu.memory_space<vmem>>, %arg9: memref<1x64xf32, #tpu.memory_space<vmem>>, %arg10: memref<64x32xf32, #tpu.memory_space<vmem>>, %arg11: memref<1x32xf32, #tpu.memory_space<vmem>>, %arg12: memref<16x1xf32, #tpu.memory_space<vmem>>, %arg13: memref<1x1xf32, #tpu.memory_space<smem>>, %arg14: memref<8x16xf32, #tpu.memory_space<vmem>>) attributes {dimension_semantics = [#tpu.dimension_semantics<parallel>], iteration_bounds = array<i64: 2>, scalar_prefetch = 0 : i64, scratch_operands = 0 : i64, tpu.core_type = #tpu.core_type<tc>, window_params = [{transform_indices = @transform_0, window_bounds = array<i64: 8, 128>}, {pipeline_mode = #tpu.pipeline_mode<synchronous>, transform_indices = @transform_1, window_bounds = array<i64: 128, 64>}, {pipeline_mode = #tpu.pipeline_mode<synchronous>, transform_indices = @transform_2, window_bounds = array<i64: 1, 64>}, {pipeline_mode = #tpu.pipeline_mode<synchronous>, transform_indices = @transform_3, window_bounds = array<i64: 64, 64>}, {pipeline_mode = #tpu.pipeline_mode<synchronous>, transform_indices = @transform_4, window_bounds = array<i64: 1, 64>}, {pipeline_mode = #tpu.pipeline_mode<synchronous>, transform_indices = @transform_5, window_bounds = array<i64: 64, 64>}, {pipeline_mode = #tpu.pipeline_mode<synchronous>, transform_indices = @transform_6, window_bounds = array<i64: 1, 64>}, {pipeline_mode = #tpu.pipeline_mode<synchronous>, transform_indices = @transform_7, window_bounds = array<i64: 64, 64>}, {pipeline_mode = #tpu.pipeline_mode<synchronous>, transform_indices = @transform_8, window_bounds = array<i64: 1, 64>}, {pipeline_mode = #tpu.pipeline_mode<synchronous>, transform_indices = @transform_9, window_bounds = array<i64: 64, 32>}, {pipeline_mode = #tpu.pipeline_mode<synchronous>, transform_indices = @transform_10, window_bounds = array<i64: 1, 32>}, {pipeline_mode = #tpu.pipeline_mode<synchronous>, transform_indices = @transform_11, window_bounds = array<i64: 16, 1>}, {transform_indices = @transform_12, window_bounds = array<i64: 1, 1>}, {transform_indices = @transform_13, window_bounds = array<i64: 8, 16>}]} {
    %c0 = arith.constant 0 : index
    %c0_0 = arith.constant 0 : index
    %0 = vector.load %arg1[%c0, %c0_0] : memref<8x128xf32, #tpu.memory_space<vmem>>, vector<8x128xf32>
    %c0_1 = arith.constant 0 : index
    %c0_2 = arith.constant 0 : index
    %1 = vector.load %arg2[%c0_1, %c0_2] : memref<128x64xf32, #tpu.memory_space<vmem>>, vector<128x64xf32>
    %cst = arith.constant dense<0.000000e+00> : vector<8x64xf32>
    %2 = tpu.matmul %0, %1, %cst {dimension_numbers = #tpu.dot_dimension_numbers<[1], [0], [0], [1], [0, 0, 1, 1], [], []>} : vector<8x128xf32>, vector<128x64xf32>, vector<8x64xf32> -> vector<8x64xf32>
    %c0_3 = arith.constant 0 : index
    %c0_4 = arith.constant 0 : index
    %3 = vector.load %arg3[%c0_3, %c0_4] : memref<1x64xf32, #tpu.memory_space<vmem>>, vector<1x64xf32>
    %4 = vector.broadcast %3 : vector<1x64xf32> to vector<8x64xf32>
    %5 = arith.addf %2, %4 : vector<8x64xf32>
    %c0_5 = arith.constant 0 : index
    %c0_6 = arith.constant 0 : index
    %6 = vector.load %arg4[%c0_5, %c0_6] : memref<64x64xf32, #tpu.memory_space<vmem>>, vector<64x64xf32>
    %cst_7 = arith.constant dense<0.000000e+00> : vector<8x64xf32>
    %7 = tpu.matmul %5, %6, %cst_7 {dimension_numbers = #tpu.dot_dimension_numbers<[1], [0], [0], [1], [0, 0, 1, 1], [], []>} : vector<8x64xf32>, vector<64x64xf32>, vector<8x64xf32> -> vector<8x64xf32>
    %c0_8 = arith.constant 0 : index
    %c0_9 = arith.constant 0 : index
    %8 = vector.load %arg5[%c0_8, %c0_9] : memref<1x64xf32, #tpu.memory_space<vmem>>, vector<1x64xf32>
    %9 = vector.broadcast %8 : vector<1x64xf32> to vector<8x64xf32>
    %10 = arith.addf %7, %9 : vector<8x64xf32>
    %11 = arith.negf %10 : vector<8x64xf32>
    %12 = math.exp %11 : vector<8x64xf32>
    %cst_10 = arith.constant 1.000000e+00 : f32
    %13 = vector.broadcast %cst_10 : f32 to vector<8x64xf32>
    %14 = arith.addf %13, %12 : vector<8x64xf32>
    %15 = arith.divf %13, %14 : vector<8x64xf32>
    %16 = arith.mulf %5, %15 : vector<8x64xf32>
    %c0_11 = arith.constant 0 : index
    %c0_12 = arith.constant 0 : index
    %17 = vector.load %arg6[%c0_11, %c0_12] : memref<64x64xf32, #tpu.memory_space<vmem>>, vector<64x64xf32>
    %cst_13 = arith.constant dense<0.000000e+00> : vector<8x64xf32>
    %18 = tpu.matmul %16, %17, %cst_13 {dimension_numbers = #tpu.dot_dimension_numbers<[1], [0], [0], [1], [0, 0, 1, 1], [], []>} : vector<8x64xf32>, vector<64x64xf32>, vector<8x64xf32> -> vector<8x64xf32>
    %c0_14 = arith.constant 0 : index
    %c0_15 = arith.constant 0 : index
    %19 = vector.load %arg7[%c0_14, %c0_15] : memref<1x64xf32, #tpu.memory_space<vmem>>, vector<1x64xf32>
    %20 = vector.broadcast %19 : vector<1x64xf32> to vector<8x64xf32>
    %21 = arith.addf %18, %20 : vector<8x64xf32>
    %c0_16 = arith.constant 0 : index
    %c0_17 = arith.constant 0 : index
    %22 = vector.load %arg8[%c0_16, %c0_17] : memref<64x64xf32, #tpu.memory_space<vmem>>, vector<64x64xf32>
    %cst_18 = arith.constant dense<0.000000e+00> : vector<8x64xf32>
    %23 = tpu.matmul %21, %22, %cst_18 {dimension_numbers = #tpu.dot_dimension_numbers<[1], [0], [0], [1], [0, 0, 1, 1], [], []>} : vector<8x64xf32>, vector<64x64xf32>, vector<8x64xf32> -> vector<8x64xf32>
    %c0_19 = arith.constant 0 : index
    %c0_20 = arith.constant 0 : index
    %24 = vector.load %arg9[%c0_19, %c0_20] : memref<1x64xf32, #tpu.memory_space<vmem>>, vector<1x64xf32>
    %25 = vector.broadcast %24 : vector<1x64xf32> to vector<8x64xf32>
    %26 = arith.addf %23, %25 : vector<8x64xf32>
    %c0_21 = arith.constant 0 : index
    %c0_22 = arith.constant 0 : index
    %27 = vector.load %arg10[%c0_21, %c0_22] : memref<64x32xf32, #tpu.memory_space<vmem>>, vector<64x32xf32>
    %cst_23 = arith.constant dense<0.000000e+00> : vector<8x32xf32>
    %28 = tpu.matmul %26, %27, %cst_23 {dimension_numbers = #tpu.dot_dimension_numbers<[1], [0], [0], [1], [0, 0, 1, 1], [], []>} : vector<8x64xf32>, vector<64x32xf32>, vector<8x32xf32> -> vector<8x32xf32>
    %c0_24 = arith.constant 0 : index
    %c0_25 = arith.constant 0 : index
    %29 = vector.load %arg11[%c0_24, %c0_25] : memref<1x32xf32, #tpu.memory_space<vmem>>, vector<1x32xf32>
    %30 = vector.broadcast %29 : vector<1x32xf32> to vector<8x32xf32>
    %31 = arith.addf %28, %30 : vector<8x32xf32>
    %32 = vector.extract_strided_slice %31 {offsets = [0, 0], sizes = [8, 16], strides = [1, 1]} : vector<8x32xf32> to vector<8x16xf32>
    %33 = vector.extract_strided_slice %31 {offsets = [0, 16], sizes = [8, 16], strides = [1, 1]} : vector<8x32xf32> to vector<8x16xf32>
    %c0_26 = arith.constant 0 : index
    %c0_27 = arith.constant 0 : index
    %34 = vector.load %arg12[%c0_26, %c0_27] : memref<16x1xf32, #tpu.memory_space<vmem>>, vector<16x1xf32>
    %cst_28 = arith.constant dense<0.000000e+00> : vector<8x1xf32>
    %35 = tpu.matmul %32, %34, %cst_28 {dimension_numbers = #tpu.dot_dimension_numbers<[1], [0], [0], [1], [0, 0, 1, 1], [], []>} : vector<8x16xf32>, vector<16x1xf32>, vector<8x1xf32> -> vector<8x1xf32>
    %c0_29 = arith.constant 0 : index
    %c0_30 = arith.constant 0 : index
    %36 = memref.load %arg13[%c0_29, %c0_30] : memref<1x1xf32, #tpu.memory_space<smem>>
    %37 = vector.broadcast %36 : f32 to vector<8x1xf32>
    %38 = arith.addf %35, %37 : vector<8x1xf32>
    %39 = arith.negf %38 : vector<8x1xf32>
    %40 = math.exp %39 : vector<8x1xf32>
    %cst_31 = arith.constant 1.000000e+00 : f32
    %41 = vector.broadcast %cst_31 : f32 to vector<8x1xf32>
    %42 = arith.addf %41, %40 : vector<8x1xf32>
    %43 = arith.divf %41, %42 : vector<8x1xf32>
    %44 = vector.broadcast %43 : vector<8x1xf32> to vector<8x16xf32>
    %45 = arith.mulf %32, %44 : vector<8x16xf32>
    %cst_32 = arith.constant 1.000000e+00 : f32
    %46 = vector.broadcast %cst_32 : f32 to vector<8x1xf32>
    %47 = arith.subf %46, %43 : vector<8x1xf32>
    %48 = vector.broadcast %47 : vector<8x1xf32> to vector<8x16xf32>
    %49 = arith.mulf %33, %48 : vector<8x16xf32>
    %50 = arith.addf %45, %49 : vector<8x16xf32>
    %c0_33 = arith.constant 0 : index
    %c0_34 = arith.constant 0 : index
    %51 = vector.load %arg14[%c0_33, %c0_34] : memref<8x16xf32, #tpu.memory_space<vmem>>, vector<8x16xf32>
    tpu.vector_store %arg14[%c0_33, %c0_34], %50 {strides = array<i32>} : memref<8x16xf32, #tpu.memory_space<vmem>>, vector<8x16xf32>,
    return
  }
  func.func @transform_0(%arg0: i32) -> (i32, i32) {
    %c0_i32 = arith.constant 0 : i32
    %c0_i32_0 = arith.constant 0 : i32
    return %arg0, %c0_i32 : i32, i32
  }
  func.func @transform_1(%arg0: i32) -> (i32, i32) {
    %c0_i32 = arith.constant 0 : i32
    %c0_i32_0 = arith.constant 0 : i32
    %c0_i32_1 = arith.constant 0 : i32
    return %c0_i32, %c0_i32_0 : i32, i32
  }
  func.func @transform_2(%arg0: i32) -> (i32, i32) {
    %c0_i32 = arith.constant 0 : i32
    %c0_i32_0 = arith.constant 0 : i32
    %c0_i32_1 = arith.constant 0 : i32
    return %c0_i32, %c0_i32_0 : i32, i32
  }
  func.func @transform_3(%arg0: i32) -> (i32, i32) {
    %c0_i32 = arith.constant 0 : i32
    %c0_i32_0 = arith.constant 0 : i32
    %c0_i32_1 = arith.constant 0 : i32
    return %c0_i32, %c0_i32_0 : i32, i32
  }
  func.func @transform_4(%arg0: i32) -> (i32, i32) {
    %c0_i32 = arith.constant 0 : i32
    %c0_i32_0 = arith.constant 0 : i32
    %c0_i32_1 = arith.constant 0 : i32
    return %c0_i32, %c0_i32_0 : i32, i32
  }
  func.func @transform_5(%arg0: i32) -> (i32, i32) {
    %c0_i32 = arith.constant 0 : i32
    %c0_i32_0 = arith.constant 0 : i32
    %c0_i32_1 = arith.constant 0 : i32
    return %c0_i32, %c0_i32_0 : i32, i32
  }
  func.func @transform_6(%arg0: i32) -> (i32, i32) {
    %c0_i32 = arith.constant 0 : i32
    %c0_i32_0 = arith.constant 0 : i32
    %c0_i32_1 = arith.constant 0 : i32
    return %c0_i32, %c0_i32_0 : i32, i32
  }
  func.func @transform_7(%arg0: i32) -> (i32, i32) {
    %c0_i32 = arith.constant 0 : i32
    %c0_i32_0 = arith.constant 0 : i32
    %c0_i32_1 = arith.constant 0 : i32
    return %c0_i32, %c0_i32_0 : i32, i32
  }
  func.func @transform_8(%arg0: i32) -> (i32, i32) {
    %c0_i32 = arith.constant 0 : i32
    %c0_i32_0 = arith.constant 0 : i32
    %c0_i32_1 = arith.constant 0 : i32
    return %c0_i32, %c0_i32_0 : i32, i32
  }
  func.func @transform_9(%arg0: i32) -> (i32, i32) {
    %c0_i32 = arith.constant 0 : i32
    %c0_i32_0 = arith.constant 0 : i32
    %c0_i32_1 = arith.constant 0 : i32
    return %c0_i32, %c0_i32_0 : i32, i32
  }
  func.func @transform_10(%arg0: i32) -> (i32, i32) {
    %c0_i32 = arith.constant 0 : i32
    %c0_i32_0 = arith.constant 0 : i32
    %c0_i32_1 = arith.constant 0 : i32
    return %c0_i32, %c0_i32_0 : i32, i32
  }
  func.func @transform_11(%arg0: i32) -> (i32, i32) {
    %c0_i32 = arith.constant 0 : i32
    %c0_i32_0 = arith.constant 0 : i32
    %c0_i32_1 = arith.constant 0 : i32
    return %c0_i32, %c0_i32_0 : i32, i32
  }
  func.func @transform_12(%arg0: i32) -> (i32, i32) {
    %c0_i32 = arith.constant 0 : i32
    %c0_i32_0 = arith.constant 0 : i32
    %c0_i32_1 = arith.constant 0 : i32
    return %c0_i32, %c0_i32_0 : i32, i32
  }
  func.func @transform_13(%arg0: i32) -> (i32, i32) {
    %c0_i32 = arith.constant 0 : i32
    %c0_i32_0 = arith.constant 0 : i32
    return %arg0, %c0_i32 : i32, i32
  }
}

</mosaic_0001>

<bundles_post_ra>
// kernel: gated_sum_forward.1
= control target key start
LH: loop header
LB: loop body
LE: loop exit
PB: predicated region body
PF: predicated region fallthrough
CT: control target
= control target key end

     0   :  { %s1425_s27 = smov 0   ;;  %s1661_s0 = inlined_call_operand.vmem [shape: f32[16,128], index: 0, kind: input, shape index: {}]   ;;  %s1662_s1 = inlined_call_operand.vmem [shape: f32[128,64], index: 1, kind: input, shape index: {}]   ;;  %s1663_s2 = inlined_call_operand.vmem [shape: f32[1,64], index: 2, kind: input, shape index: {}]   ;;  %s1664_s3 = inlined_call_operand.vmem [shape: f32[64,64], index: 3, kind: input, shape index: {}]   ;;  %s1665_s4 = inlined_call_operand.vmem [shape: f32[1,64], index: 4, kind: input, shape index: {}]   ;;  %s1666_s5 = inlined_call_operand.vmem [shape: f32[64,64], index: 5, kind: input, shape index: {}]   ;;  %s1667_s6 = inlined_call_operand.vmem [shape: f32[1,64], index: 6, kind: input, shape index: {}]   ;;  %s1668_s7 = inlined_call_operand.vmem [shape: f32[64,64], index: 7, kind: input, shape index: {}]   ;;  %s1669_s8 = inlined_call_operand.vmem [shape: f32[1,64], index: 8, kind: input, shape index: {}]   ;;  %s1670_s9 = inlined_call_operand.vmem [shape: f32[64,32], index: 9, kind: input, shape index: {}]   ;;  %s1671_s10 = inlined_call_operand.vmem [shape: f32[1,32], index: 10, kind: input, shape index: {}]   ;;  %s1672_s11 = inlined_call_operand.vmem [shape: f32[16,1], index: 11, kind: input, shape index: {}]   ;;  %s1673_s12 = inlined_call_operand.<no memory space> [shape: f32[1,1], index: 12, kind: input, shape index: {}]   ;;  %s1674_s13 = inlined_call_operand.vmem [shape: f32[16,16], index: 13, kind: output, shape index: {}]  }
   0x1   :  { %18 = sst [smem:[#allocation2]] %s1673_s12 }
   0x2 LB: > { %s1047_s28 = sadd.s32 4294967295, %s1345_s27   ;;  %p1051_p0 = scmp.ge.s32.totalorder %s1345_s27, 1  ;;  %s1345_s27 = sphi %s1425_s27, %s24_s27  }
   0x3   : > { %p387_p1 = scmp.lt.s32.totalorder %s1345_s27, 3 }
   0x5   : > { %p388_p2 = pnand %p1051_p0, %p387_p1 }
   0x6   : > { %v438_v0 = vld [vmem:[%s1662_s1] sm:$0xff] (!%p388_p2)  ;;  %v439_v1 = vld [vmem:[%s1662_s1 + $0x8] sm:$0xff] (!%p388_p2)  ;;  %v440_v2 = vld [vmem:[%s1662_s1 + $0x10] sm:$0xff] (!%p388_p2)  ;;  %v1347_v3 = vmov (!%p388_p2), 0.0|0.0   ;;  %vm1348_vm0 = vmmov (!%p388_p2), 0   ;;  %v1349_v6 = vmov (!%p388_p2), 0.0  }
   0x7   : > { %391 = sbr.rel (%p388_p2) target bundleno = 1628 (0x65c), region = 72  ;;  %1242 = vmatprep.subr.bf16.mxu0 (!%p388_p2), %v1347_v3  ;;  %v1243_v4 = vpack.c.bf16 (!%p388_p2), %v439_v1, %v438_v0  ;;  %v441_v5 = vld [vmem:[%s1662_s1 + $0x18] sm:$0xff] (!%p388_p2)  ;;  %1156 = vmatprep.mubr.msk.f32.mxu0 (!%p388_p2), %vm1348_vm0, %v1349_v6  ;;  %v442_v8 = vld [vmem:[%s1662_s1 + $0x20] sm:$0xff] (!%p388_p2)  ;;  %v443_v9 = vld [vmem:[%s1662_s1 + $0x28] sm:$0xff] (!%p388_p2)  ;;  %p429_p3 = scmp.lt.s32.totalorder (!%p388_p2), %s1047_s28, 1  ;;  %vm546_vm1 = vcmask (!%p388_p2), 523264  }
   0x8   : > { %1266 = vmatprep.subr.bf16.mxu1 (!%p388_p2), %v1347_v3  ;;  %1175 = vmatprep.mubr.msk.f32.mxu1 (!%p388_p2), %vm1348_vm0, %v1349_v6  ;;  %v1246_v7 = vpack.c.bf16 (!%p388_p2), %v441_v5, %v440_v2  ;;  %v531_v10 = vld [vmem:[%s1664_s3] sm:$0xff] (!%p388_p2)  ;;  %v532_v11 = vld [vmem:[%s1664_s3 + $0x8] sm:$0xff] (!%p388_p2)  ;;  %v533_v13 = vld [vmem:[%s1664_s3 + $0x10] sm:$0xff] (!%p388_p2)  ;;  %v1249_v15 = vpack.c.bf16 (!%p388_p2), %v443_v9, %v442_v8  ;;  %vm895_vm2 = vcmask (!%p388_p2), 130048   ;;  %s893_s17 = sld [smem:[#allocation2]] (!%p388_p2)  ;;  %s1351_s18 = smov (!%p388_p2), 112  }
   0x9   : > { %1244 = vmatpush3.bf16.msra.mxu0 (!%p388_p2), %v1243_v4  ;;  %v1267_v12 = vpack.c.bf16 (!%p388_p2), %v532_v11, %v531_v10  ;;  %v534_v14 = vld [vmem:[%s1664_s3 + $0x18] sm:$0xff] (!%p388_p2)  ;;  %v444_v16 = vld [vmem:[%s1662_s1 + $0x30] sm:$0xff] (!%p388_p2)  ;;  %v535_v19 = vld [vmem:[%s1664_s3 + $0x20] sm:$0xff] (!%p388_p2) }
   0xa   : > { %1245 = vmatprep.subr.bf16.mxu0 (!%p388_p2), %v1347_v3  ;;  %v445_v17 = vld [vmem:[%s1662_s1 + $0x38] sm:$0xff] (!%p388_p2)  ;;  %v1270_v18 = vpack.c.bf16 (!%p388_p2), %v534_v14, %v533_v13  ;;  %v536_v20 = vld [vmem:[%s1664_s3 + $0x28] sm:$0xff] (!%p388_p2)  ;;  %v446_v22 = vld [vmem:[%s1662_s1 + $0x40] sm:$0xff] (!%p388_p2) }
   0xb   : > { %1268 = vmatpush3.bf16.msra.mxu1 (!%p388_p2), %v1267_v12  ;;  %v1252_v21 = vpack.c.bf16 (!%p388_p2), %v445_v17, %v444_v16  ;;  %v447_v23 = vld [vmem:[%s1662_s1 + $0x48] sm:$0xff] (!%p388_p2)  ;;  %v1273_v24 = vpack.c.bf16 (!%p388_p2), %v536_v20, %v535_v19  ;;  %v448_v26 = vld [vmem:[%s1662_s1 + $0x50] sm:$0xff] (!%p388_p2)  ;;  %v449_v27 = vld [vmem:[%s1662_s1 + $0x58] sm:$0xff] (!%p388_p2) }
   0xc   : > { %1269 = vmatprep.subr.bf16.mxu1 (!%p388_p2), %v1347_v3  ;;  %v1255_v25 = vpack.c.bf16 (!%p388_p2), %v447_v23, %v446_v22  ;;  %v1258_v28 = vpack.c.bf16 (!%p388_p2), %v449_v27, %v448_v26  ;;  %v450_v29 = vld [vmem:[%s1662_s1 + $0x60] sm:$0xff] (!%p388_p2)  ;;  %v451_v30 = vld [vmem:[%s1662_s1 + $0x68] sm:$0xff] (!%p388_p2)  ;;  %v452_v32 = vld [vmem:[%s1662_s1 + $0x70] sm:$0xff] (!%p388_p2) }
   0xd   : > { %1247 = vmatpush3.bf16.msra.mxu0 (!%p388_p2), %v1246_v7  ;;  %v1261_v31 = vpack.c.bf16 (!%p388_p2), %v451_v30, %v450_v29  ;;  %v453_v33 = vld [vmem:[%s1662_s1 + $0x78] sm:$0xff] (!%p388_p2)  ;;  %v537_v36 = vld [vmem:[%s1664_s3 + $0x30] sm:$0xff] (!%p388_p2)  ;;  %v1054_v39 = vld [vmem:[%s1663_s2] ss:$0 sm:$0xff] (!%p388_p2) }
   0xe   : > { %1248 = vmatprep.subr.bf16.mxu0 %v1347_v3  ;;  %s1676_s28 = smov (!%p429_p3, %s1047_s28), 1  ;;  %v1264_v34 = vpack.c.bf16 %v453_v33, %v452_v32  ;;  %v538_v37 = vld [vmem:[%s1664_s3 + $0x38] sm:$0xff]  ;;  %v627_v43 = vld [vmem:[%s1666_s5] sm:$0xff]  ;;  %v628_v44 = vld [vmem:[%s1666_s5 + $0x8] sm:$0xff] }
   0xf   : > { %1271 = vmatpush3.bf16.msra.mxu1 %v1270_v18  ;;  %s1052_s23 = sshll.u32 %s1676_s28, 3  ;;  %v1276_v38 = vpack.c.bf16 %v538_v37, %v537_v36  ;;  %v1279_v45 = vpack.c.bf16 %v628_v44, %v627_v43  ;;  %v629_v46 = vld [vmem:[%s1666_s5 + $0x10] sm:$0xff]  ;;  %v630_v47 = vld [vmem:[%s1666_s5 + $0x18] sm:$0xff]  ;;  %v631_v49 = vld [vmem:[%s1666_s5 + $0x20] sm:$0xff] }
  0x10   : > { %1272 = vmatprep.subr.bf16.mxu1 %v1347_v3  ;;  %s432_s26 = scalar_lea.vmem %s1661_s0, %s1052_s23  ;;  %v1282_v48 = vpack.c.bf16 %v630_v47, %v629_v46  ;;  %v632_v50 = vld [vmem:[%s1666_s5 + $0x28] sm:$0xff]  ;;  %v633_v52 = vld [vmem:[%s1666_s5 + $0x30] sm:$0xff]  ;;  %v634_v53 = vld [vmem:[%s1666_s5 + $0x38] sm:$0xff]  ;;  %s436_s21 = scalar_lea.vmem %s1674_s13, %s1052_s23 }
  0x11   : > { %1250 = vmatpush3.bf16.msra.mxu0 %v1249_v15  ;;  %v437_v35 = vld [vmem:[%s432_s26] sm:$0xff]  ;;  %v1285_v51 = vpack.c.bf16 %v632_v50, %v631_v49  ;;  %v1288_v54 = vpack.c.bf16 %v634_v53, %v633_v52  ;;  %v716_v56 = vld [vmem:[%s1668_s7 + $0x8] sm:$0xff]  ;;  %v717_v57 = vld [vmem:[%s1668_s7 + $0x10] sm:$0xff] }
  0x12   : > { %1251 = vmatprep.subr.bf16.mxu0 %v1347_v3  ;;  %v715_v55 = vld [vmem:[%s1668_s7] sm:$0xff]  ;;  %v718_v59 = vld [vmem:[%s1668_s7 + $0x18] sm:$0xff]  ;;  %v720_v62 = vld [vmem:[%s1668_s7 + $0x28] sm:$0xff] }
  0x13   : > { %1274 = vmatpush3.bf16.msra.mxu1 %v1273_v24  ;;  %v1291_v58 = vpack.c.bf16 %v716_v56, %v715_v55  ;;  %v1294_v60 = vpack.c.bf16 %v718_v59, %v717_v57  ;;  %v719_v61 = vld [vmem:[%s1668_s7 + $0x20] sm:$0xff]  ;;  %v721_v11 = vld [vmem:[%s1668_s7 + $0x30] sm:$0xff]  ;;  %v722_v12 = vld [vmem:[%s1668_s7 + $0x38] sm:$0xff] }
  0x14   : > { %1275 = vmatprep.subr.bf16.mxu1 %v1347_v3  ;;  %v1297_v63 = vpack.c.bf16 %v720_v62, %v719_v61  ;;  %v1055_v0 = vld [vmem:[%s1665_s4] ss:$0 sm:$0xff]  ;;  %v1300_v13 = vpack.c.bf16 %v722_v12, %v721_v11  ;;  %v804_v15 = vld [vmem:[%s1670_s9 + $0x8] sm:$0xff]  ;;  %v805_v16 = vld [vmem:[%s1670_s9 + $0x10] sm:$0xff] }
  0x15   : > { %1253 = vmatpush3.bf16.msra.mxu0 %v1252_v21  ;;  %v803_v14 = vld [vmem:[%s1670_s9] sm:$0xff]  ;;  %v806_v18 = vld [vmem:[%s1670_s9 + $0x18] sm:$0xff]  ;;  %v808_v21 = vld [vmem:[%s1670_s9 + $0x28] sm:$0xff] }
  0x16   : > { %1254 = vmatprep.subr.bf16.mxu0 %v1347_v3  ;;  %v1303_v17 = vpack.c.bf16 %v804_v15, %v803_v14  ;;  %v1306_v19 = vpack.c.bf16 %v806_v18, %v805_v16  ;;  %v807_v20 = vld [vmem:[%s1670_s9 + $0x20] sm:$0xff]  ;;  %v809_v27 = vld [vmem:[%s1670_s9 + $0x30] sm:$0xff]  ;;  %v892_v30 = vld [vmem:[%s1672_s11 + $0x8] sm:$0xff] }
  0x17   : > { %1277 = vmatpush3.bf16.msra.mxu1 %v1276_v38  ;;  %v1309_v22 = vpack.c.bf16 %v808_v21, %v807_v20  ;;  %v1058_v23 = vld [vmem:[%s1667_s6] ss:$0 sm:$0xff] }
  0x18   : > { %1278 = vmatprep.subr.bf16.mxu1 %v1347_v3  ;;  %v891_v29 = vld [vmem:[%s1672_s11] sm:$0xff] }
  0x19   : > { %1256 = vmatpush3.bf16.msra.mxu0 %v1255_v25 }
  0x1a   : > { %1257 = vmatprep.subr.bf16.mxu0 %v1347_v3 }
  0x1d   : > { %1259 = vmatpush3.bf16.msra.mxu0 %v1258_v28 }
  0x1e   : > { %1260 = vmatprep.subr.bf16.mxu0 %v1347_v3 }
  0x21   : > { %1262 = vmatpush3.bf16.msra.mxu0 %v1261_v31  ;;  %v1315_v31 = vpack.c.bf16 %v892_v30, %v891_v29 }
  0x22   : > { %1263 = vmatprep.subr.bf16.mxu0 %v1347_v3 }
  0x25   : > { %1265 = vmatpush3.bf16.msra.mxu0 %v1264_v34 }
  0x26   : > { %1290 = vmatprep.subr.bf16.mxu0 %v1347_v3 }
  0x28   : > { %1157 = vmatmul.mubr.f32.vlgmr.msra.gmra.mrb[0].mxu0 %v437_v35  ;;  %v1062_v35 = vld [vmem:[%s1671_s10] ss:$0 sm:$0xff] }
  0x29   : > { %1213 = vmatprep.mubr.msk.f32.mxu0 %vm1348_vm0, %v1349_v6  ;;  %1292 = vmatpush3.bf16.msra.mxu0 %v1291_v58 }
  0x2a   : > { %1293 = vmatprep.subr.bf16.mxu0 %v1347_v3 }
  0x2d   : > { %1295 = vmatpush3.bf16.msra.mxu0 %v1294_v60 }
  0x2e   : > { %1296 = vmatprep.subr.bf16.mxu0 %v1347_v3 }
  0x31   : > { %1298 = vmatpush3.bf16.msra.mxu0 %v1297_v63 }
  0x32   : > { %1299 = vmatprep.subr.bf16.mxu0 %v1347_v3 }
  0x35   : > { %1301 = vmatpush3.bf16.msra.mxu0 %v1300_v13 }
  0x36   : > { %1314 = vmatprep.subr.bf16.mxu0 %v1347_v3 }
  0xfb   : > { %v527_v40 = vpop.f32.mrb[0].mxu0 }
  0xfc   : > { %v528_v41 = vadd.f32 %v1054_v39, %v527_v40  ;;  %v1158_v42 = vpop.f32.mrb[1].mxu0  ;;  %v1350_v39 = vmov 0   ;;  %v894_v40 = vstv %s893_s17 }
  0xfd   : > { %1330 = vset.pattern.permute.xlu0 %v1350_v39 }
  0xfe   : > { %1176 = vmatmul.mubr.msk.f32.vlgmr.msra.gmra.mrb[0].mxu1 %vm546_vm1, %v528_v41 }
  0xff   : > { %1194 = vmatprep.mubr.msk.f32.mxu1 %vm1348_vm0, %v1349_v6  ;;  %1280 = vmatpush3.bf16.msra.mxu1 %v1279_v45 }
 0x100   : > { %1281 = vmatprep.subr.bf16.mxu1 %v1347_v3 }
 0x103   : > { %1283 = vmatpush3.bf16.msra.mxu1 %v1282_v48 }
 0x104   : > { %1284 = vmatprep.subr.bf16.mxu1 %v1347_v3 }
 0x107   : > { %1286 = vmatpush3.bf16.msra.mxu1 %v1285_v51 }
 0x108   : > { %1287 = vmatprep.subr.bf16.mxu1 %v1347_v3 }
 0x10b   : > { %1289 = vmatpush3.bf16.msra.mxu1 %v1288_v54 }
 0x10c   : > { %1302 = vmatprep.subr.bf16.mxu1 %v1347_v3 }
 0x1d1   : > { %v616_v1 = vpop.f32.mrb[0].mxu1 }
 0x1d2   : > { %v617_v2 = vadd.f32 %v1055_v0, %v616_v1  ;;  %v1177_v4 = vpop.f32.mrb[1].mxu1 }
 0x1d4   : > { %v1057_v5 = vmul.f32 -1.442695, %v617_v2 }
 0x1d6   : > { %1331 = vpow2.f32 %v1057_v5 }
 0x1e0   : > { %v1332_v7 = vpop.eup %1331 }
 0x1e1   : > { %v623_v8 = vadd.f32 1.0, %v1332_v7 }
 0x1e3   : > { %1333 = vrcp.f32 %v623_v8 }
 0x1ed   : > { %v1334_v9 = vpop.eup %1333 }
 0x1ee   : > { %v626_v10 = vmul.f32 %v1334_v9, %v528_v41 }
 0x1f0   : > { %1195 = vmatmul.mubr.msk.f32.vlgmr.msra.gmra.mrb[2].mxu1 %vm546_vm1, %v626_v10 }
 0x1f1   : > { %1232 = vmatprep.mubr.msk.f32.mxu1 %vm1348_vm0, %v1349_v6  ;;  %1304 = vmatpush3.bf16.msra.mxu1 %v1303_v17 }
 0x1f2   : > { %1305 = vmatprep.subr.bf16.mxu1 %v1347_v3 }
 0x1f5   : > { %1307 = vmatpush3.bf16.msra.mxu1 %v1306_v19 }
 0x1f6   : > { %1308 = vmatprep.subr.bf16.mxu1 %v1347_v3 }
 0x1f9   : > { %1310 = vmatpush3.bf16.msra.mxu1 %v1309_v22 }
 0x1fa   : > { %1311 = vmatprep.subr.bf16.mxu1 %v1347_v3  ;;  %v810_v3 = vld [vmem:[%s1670_s9 + $0x38] sm:$0xff] }
 0x1fb   : > { %v1312_v28 = vpack.c.bf16 %v810_v3, %v809_v27 }
 0x1fd   : > { %1313 = vmatpush3.bf16.msra.mxu1 %v1312_v28 }
 0x2c3   : > { %v711_v24 = vpop.f32.mrb[2].mxu1 }
 0x2c4   : > { %v712_v25 = vadd.f32 %v1058_v23, %v711_v24  ;;  %v1196_v26 = vpop.f32.mrb[3].mxu1 }
 0x2c6   : > { %1214 = vmatmul.mubr.msk.f32.vlgmr.msra.gmra.mrb[2].mxu0 %vm546_vm1, %v712_v25 }
 0x2c7   : > { %1239 = vmatprep.mubr.msk.f32.mxu0 %vm1348_vm0, %v1349_v6  ;;  %1316 = vmatpush3.bf16.msra.mxu0 %v1315_v31  ;;  %v1060_v6 = vld [vmem:[%s1669_s8] ss:$0 sm:$0xff] }
 0x399   : > { %v799_v32 = vpop.f32.mrb[2].mxu0 }
 0x39a   : > { %v800_v33 = vadd.f32 %v1060_v6, %v799_v32  ;;  %v1215_v34 = vpop.f32.mrb[3].mxu0 }
 0x39c   : > { %1233 = vmatmul.mubr.msk.f32.vlgmr.msra.gmra.mrb[4].mxu1 %vm546_vm1, %v800_v33 }
 0x46f   : > { %v887_v36 = vpop.f32.mrb[4].mxu1 }
 0x470   : > { %v888_v37 = vadd.f32 %v1062_v35, %v887_v36  ;;  %v1234_v38 = vpop.f32.mrb[5].mxu1 }
 0x472   : > { %1240 = vmatmul.mubr.msk.f32.vlgmr.msra.gmra.mrb[4].mxu0 %vm895_vm2, %v888_v37 }
 0x545   : > { %v965_v41 = vpop.f32.mrb[4].mxu0 }
 0x546   : > { %v966_v42 = vadd.f32 %v965_v41, %v894_v40  ;;  %v1241_v43 = vpop.f32.mrb[5].mxu0 }
 0x548   : > { %v1065_v44 = vmul.f32 -1.442695, %v966_v42 }
 0x54a   : > { %1335 = vpow2.f32 %v1065_v44 }
 0x554   : > { %v1336_v45 = vpop.eup %1335 }
 0x555   : > { %v972_v46 = vadd.f32 1.0, %v1336_v45 }
 0x557   : > { %1337 = vrcp.f32 %v972_v46 }
 0x561   : > { %v1338_v47 = vpop.eup %1337 }
 0x562   : > { %v981_v48 = vsub.f32 1.0, %v1338_v47 }
 0x564   : > { %984 = vperm.xlu0 %1330, %v981_v48  }
 0x568   : > { %977 = vperm.xlu0 %1330, %v1338_v47  }
 0x5e3   : > { %v985_v49 = vpop.permute.xlu0 %984 }
 0x5e4   : > { %v987_v50 = vmul.f32 %v985_v49, %v888_v37 }
 0x5e6   : > { %989 = vrot.lane.b32.xlu1 %v987_v50, %s1351_s18 }
 0x5e7   : > { %v978_v51 = vpop.permute.xlu0 %977 }
 0x5e8   : > { %v980_v52 = vmul.f32 %v978_v51, %v888_v37 }
 0x658   : > { %v990_v53 = vpop.permute.xlu1 %989 }
 0x659   : > { %v992_v54 = vadd.f32 %v990_v53, %v980_v52 }
 0x65b   : > { %993 = vst.msk [vmem:[%s436_s21] sm:$0xff] %vm895_vm2, %v992_v54 }
 0x65c PF: > { %s24_s27 = sadd.s32 1, %s1345_s27  }
 0x65d   : > { %p21_p4 = scmp.ge.s32.totalorder %s24_s27, 4  }
 0x65f   :  { %23 = sbr.rel (!%p21_p4) target bundleno = 2 (0x2), region = 102 }

</bundles_post_ra>
